<compile_context>
chip_gen: v7x
topology: tpu7x:2x2x1
jax: 0.10.0
libtpu: 0.0.40
codegen_flags: <defaults>
</compile_context>

<pallas_src>
import functools
import math

import jax
import jax.numpy as jnp
from jax import lax
from jax.experimental import pallas as pl
from jax.experimental.pallas import tpu as pltpu


_SQRT1_2 = 1.0 / math.sqrt(2.0)
_MiB = 1024 * 1024
# Conservative default budget: v7x has 64 MiB physical VMEM per TensorCore;
# leave headroom for compiler-internal scratch and pipeline slack.
_DEFAULT_VMEM_BUDGET = 48 * _MiB


def _gelu_exact(h):
    # Exact erf-form GELU (torch.nn.GELU default), elementwise in f32.
    return 0.5 * h * (1.0 + lax.erf(h * _SQRT1_2))


# ------------------- kernel A: weights fully VMEM-resident --------------------
def _ffn_resident_kernel(x_ref, w1_ref, b1_ref, w2_ref, b2_ref, o_ref):
    x = x_ref[...]                                               # (tm, D) f32
    h = jnp.dot(x.astype(jnp.bfloat16), w1_ref[...],
                preferred_element_type=jnp.float32)              # (tm, H) f32
    h = _gelu_exact(h + b1_ref[...])
    # TODO(synk): dropout(p=0.0) is an identity here; training-mode p>0 would
    # need pltpu.prng_seed / prng_random_bits masking.
    y = jnp.dot(h.astype(jnp.bfloat16), w2_ref[...],
                preferred_element_type=jnp.float32)              # (tm, D) f32
    o_ref[...] = (y + b2_ref[...]).astype(o_ref.dtype)


# ------------------- kernel B: hidden-dim tiled + accumulator -----------------
def _ffn_htiled_kernel(x_ref, w1_ref, b1_ref, w2_ref, b2_ref, o_ref, acc_ref):
    hi = pl.program_id(1)

    @pl.when(hi == 0)
    def _():
        acc_ref[...] = jnp.zeros_like(acc_ref)

    x = x_ref[...]                                               # (tm, D) f32
    h = jnp.dot(x.astype(jnp.bfloat16), w1_ref[...],
                preferred_element_type=jnp.float32)              # (tm, th) f32
    h = _gelu_exact(h + b1_ref[...])
    acc_ref[...] += jnp.dot(h.astype(jnp.bfloat16), w2_ref[...],
                            preferred_element_type=jnp.float32)  # (tm, D) f32

    @pl.when(hi == pl.num_programs(1) - 1)
    def _():
        o_ref[...] = (acc_ref[...] + b2_ref[...]).astype(o_ref.dtype)


# ------------------------------ sizing helpers --------------------------------
def _round_up(a, b):
    return (a + b - 1) // b * b


def _resident_footprint(tm, d, h):
    weights = 2 * d * h * 2                   # w1 + w2 bf16, single copy
    biases = (h + d) * 4
    x_tiles = 2 * tm * d * 4                  # double-buffered input tile
    o_tiles = 2 * tm * d * 4                  # double-buffered output tile
    inter = tm * h * 4 + tm * h * 2 + tm * d * 2   # f32 GELU tmp + bf16 casts
    return weights + biases + x_tiles + o_tiles + inter


def _htiled_footprint(tm, th, d):
    w_tiles = 2 * (2 * d * th) * 2            # double-buffered bf16 w1/w2 tiles
    b_tiles = 2 * 2 * th * 4 + 2 * d * 4
    x_tiles = 2 * tm * d * 4
    o_tiles = 2 * tm * d * 4
    acc = tm * d * 4
    inter = tm * th * 4 + tm * th * 2 + tm * d * 2
    return w_tiles + b_tiles + x_tiles + o_tiles + acc + inter


# ---------------------------------- wrapper ------------------------------------
def feedforward(x, w1, b1, w2, b2, *, max_vmem_bytes=None, force_h_tile=None):
    """Fused Linear -> GELU -> Dropout(0) -> Linear -> Dropout(0).

    x: (B, N, D) f32; w1: (D, H); b1: (1, H); w2: (H, D); b2: (1, D).
    """
    B, N, D = x.shape
    H = w1.shape[1]
    M = B * N
    budget = _DEFAULT_VMEM_BUDGET if max_vmem_bytes is None else max_vmem_bytes

    # Row tile: one grid step for small problems (each extra grid step costs
    # ~0.35us and, on single-TC v5e/v6e, just halves the MXU row fill); fixed
    # 512-row blocks (multiple of 8/16) at scale.
    tm = M if M <= 512 else 512

    use_h_tiling = (force_h_tile is not None
                    or _resident_footprint(tm, D, H) > budget)

    th = None
    if use_h_tiling:
        if force_h_tile is not None:
            th = force_h_tile
        elif H <= 128:
            th = H
        else:
            th = 128
            for cand in (2048, 1024, 512, 256):
                if cand <= H and _htiled_footprint(tm, cand, D) <= budget:
                    th = cand
                    break
            while tm > 64 and _htiled_footprint(tm, th, D) > budget:
                tm = max(64, tm // 2)

    M_pad = _round_up(M, tm)
    x2 = x.reshape(M, D)
    if M_pad != M:
        x2 = jnp.pad(x2, ((0, M_pad - M), (0, 0)))

    if not use_h_tiling:
        # Fully-resident weights (bf16, cast once), rows tiled across the grid.
        w1b = w1.astype(jnp.bfloat16)
        w2b = w2.astype(jnp.bfloat16)
        grid = (M_pad // tm,)
        vmem_limit = int(min(max(_resident_footprint(tm, D, H) * 3 // 2,
                                 16 * _MiB), 64 * _MiB))
        out = pl.pallas_call(
            _ffn_resident_kernel,
            out_shape=jax.ShapeDtypeStruct((M_pad, D), x.dtype),
            grid=grid,
            in_specs=[
                pl.BlockSpec((tm, D), lambda i: (i, 0)),             # x rows
                # Whole-array VMEM residency for the params: single copy, no
                # double-buffered pipeline, no per-step re-DMA.
                pl.BlockSpec(memory_space=pltpu.MemorySpace.VMEM),   # w1
                pl.BlockSpec(memory_space=pltpu.MemorySpace.VMEM),   # b1
                pl.BlockSpec(memory_space=pltpu.MemorySpace.VMEM),   # w2
                pl.BlockSpec(memory_space=pltpu.MemorySpace.VMEM),   # b2
            ],
            out_specs=pl.BlockSpec((tm, D), lambda i: (i, 0)),
            compiler_params=pltpu.CompilerParams(
                dimension_semantics=("parallel",),
                vmem_limit_bytes=vmem_limit),
        )(x2, w1b, b1, w2b, b2)
    else:
        # Hidden-dim tiling: w1 columns / w2 rows split into th-wide tiles,
        # matmul-2 accumulated into a (tm, D) f32 VMEM scratch across the
        # "arbitrary" h axis. Zero-padded hidden units contribute exactly 0.
        H_pad = _round_up(H, th)
        if H_pad != H:
            w1 = jnp.pad(w1, ((0, 0), (0, H_pad - H)))
            b1 = jnp.pad(b1, ((0, 0), (0, H_pad - H)))
            w2 = jnp.pad(w2, ((0, H_pad - H), (0, 0)))
        w1b = w1.astype(jnp.bfloat16)
        w2b = w2.astype(jnp.bfloat16)
        grid = (M_pad // tm, H_pad // th)
        vmem_limit = int(min(max(_htiled_footprint(tm, th, D) * 3 // 2,
                                 16 * _MiB), 64 * _MiB))
        out = pl.pallas_call(
            _ffn_htiled_kernel,
            out_shape=jax.ShapeDtypeStruct((M_pad, D), x.dtype),
            grid=grid,
            in_specs=[
                pl.BlockSpec((tm, D), lambda i, h: (i, 0)),   # x rows
                pl.BlockSpec((D, th), lambda i, h: (0, h)),   # w1 col tile
                pl.BlockSpec((1, th), lambda i, h: (0, h)),   # b1 tile
                pl.BlockSpec((th, D), lambda i, h: (h, 0)),   # w2 row tile
                pl.BlockSpec((1, D), lambda i, h: (0, 0)),    # b2
            ],
            out_specs=pl.BlockSpec((tm, D), lambda i, h: (i, 0)),
            scratch_shapes=[pltpu.VMEM((tm, D), jnp.float32)],
            compiler_params=pltpu.CompilerParams(
                dimension_semantics=("parallel", "arbitrary"),
                vmem_limit_bytes=vmem_limit),
        )(x2, w1b, b1, w2b, b2)

    if M_pad != M:
        out = out[:M]
    return out.reshape(B, N, D)


# ------------------------------ pure-JAX reference -----------------------------
def feedforward_ref(x, w1, b1, w2, b2):
    h = x @ w1 + b1
    h = 0.5 * h * (1.0 + lax.erf(h * _SQRT1_2))
    return h @ w2 + b2


# ------------------------------------ main --------------------------------------
if __name__ == "__main__":
    key = jax.random.PRNGKey(0)

    def make_params(k, dim, hidden):
        k1, k2, k3, k4 = jax.random.split(k, 4)
        # PyTorch nn.Linear default init: U(-1/sqrt(fan_in), 1/sqrt(fan_in)).
        bound1 = 1.0 / math.sqrt(dim)
        bound2 = 1.0 / math.sqrt(hidden)
        w1 = jax.random.uniform(k1, (dim, hidden), jnp.float32, -bound1, bound1)
        b1 = jax.random.uniform(k2, (1, hidden), jnp.float32, -bound1, bound1)
        w2 = jax.random.uniform(k3, (hidden, dim), jnp.float32, -bound2, bound2)
        b2 = jax.random.uniform(k4, (1, dim), jnp.float32, -bound2, bound2)
        return w1, b1, w2, b2

    # bf16 MXU operands with f32 accumulation -> slightly looser tolerance vs
    # the all-f32 reference.
    RTOL = ATOL = 2e-2

    # --- Test 1: toy module sizes -> single grid step, fully-resident weights.
    kx, kp, key = jax.random.split(key, 3)
    B, N, DIM, HIDDEN = 2, 64, 32, 64
    x = jax.random.normal(kx, (B, N, DIM), jnp.float32)
    w1, b1, w2, b2 = make_params(kp, DIM, HIDDEN)
    out = jax.block_until_ready(jax.jit(feedforward)(x, w1, b1, w2, b2))
    ref = feedforward_ref(x, w1, b1, w2, b2)
    assert out.shape == (B, N, DIM), out.shape
    assert jnp.allclose(out, ref, rtol=RTOL, atol=ATOL), (
        float(jnp.max(jnp.abs(out - ref))))

    # --- Test 2: exercise the row-tiled + H-tiled accumulator path.
    kx, kp, key = jax.random.split(key, 3)
    B2, N2, DIM2, HIDDEN2 = 4, 256, 128, 256
    x2 = jax.random.normal(kx, (B2, N2, DIM2), jnp.float32)
    p2 = make_params(kp, DIM2, HIDDEN2)
    ff_htiled = jax.jit(functools.partial(feedforward, force_h_tile=128))
    out2 = jax.block_until_ready(ff_htiled(x2, *p2))
    ref2 = feedforward_ref(x2, *p2)
    assert out2.shape == (B2, N2, DIM2), out2.shape
    assert jnp.allclose(out2, ref2, rtol=RTOL, atol=ATOL), (
        float(jnp.max(jnp.abs(out2 - ref2))))

    print("KERNEL_OK")
</pallas_src>

<mosaic_0001>
module attributes {stable_mosaic.version = 11 : i64} {
  func.func @_ffn_resident_kernel(%arg0: i32, %arg1: memref<128x32xf32, #tpu.memory_space<vmem>>, %arg2: memref<32x64xbf16, #tpu.memory_space<vmem>>, %arg3: memref<1x64xf32, #tpu.memory_space<vmem>>, %arg4: memref<64x32xbf16, #tpu.memory_space<vmem>>, %arg5: memref<1x32xf32, #tpu.memory_space<vmem>>, %arg6: memref<128x32xf32, #tpu.memory_space<vmem>>) attributes {dimension_semantics = [#tpu.dimension_semantics<parallel>], iteration_bounds = array<i64: 1>, scalar_prefetch = 0 : i64, scratch_operands = 0 : i64, tpu.core_type = #tpu.core_type<tc>, window_params = [{transform_indices = @transform_0, window_bounds = array<i64: 128, 32>}, {pipeline_mode = #tpu.pipeline_mode<synchronous>, transform_indices = @transform_1, window_bounds = array<i64: 32, 64>}, {pipeline_mode = #tpu.pipeline_mode<synchronous>, transform_indices = @transform_2, window_bounds = array<i64: 1, 64>}, {pipeline_mode = #tpu.pipeline_mode<synchronous>, transform_indices = @transform_3, window_bounds = array<i64: 64, 32>}, {pipeline_mode = #tpu.pipeline_mode<synchronous>, transform_indices = @transform_4, window_bounds = array<i64: 1, 32>}, {transform_indices = @transform_5, window_bounds = array<i64: 128, 32>}]} {
    %c0 = arith.constant 0 : index
    %c0_0 = arith.constant 0 : index
    %0 = vector.load %arg1[%c0, %c0_0] : memref<128x32xf32, #tpu.memory_space<vmem>>, vector<128x32xf32>
    %1 = arith.truncf %0 : vector<128x32xf32> to vector<128x32xbf16>
    %c0_1 = arith.constant 0 : index
    %c0_2 = arith.constant 0 : index
    %2 = vector.load %arg2[%c0_1, %c0_2] : memref<32x64xbf16, #tpu.memory_space<vmem>>, vector<32x64xbf16>
    %cst = arith.constant dense<0.000000e+00> : vector<128x64xf32>
    %3 = tpu.matmul %1, %2, %cst {dimension_numbers = #tpu.dot_dimension_numbers<[1], [0], [0], [1], [0, 0, 1, 1], [], []>} : vector<128x32xbf16>, vector<32x64xbf16>, vector<128x64xf32> -> vector<128x64xf32>
    %c0_3 = arith.constant 0 : index
    %c0_4 = arith.constant 0 : index
    %4 = vector.load %arg3[%c0_3, %c0_4] : memref<1x64xf32, #tpu.memory_space<vmem>>, vector<1x64xf32>
    %5 = vector.broadcast %4 : vector<1x64xf32> to vector<128x64xf32>
    %6 = arith.addf %3, %5 : vector<128x64xf32>
    %cst_5 = arith.constant 5.000000e-01 : f32
    %7 = vector.broadcast %cst_5 : f32 to vector<128x64xf32>
    %8 = arith.mulf %7, %6 : vector<128x64xf32>
    %cst_6 = arith.constant 0.707106769 : f32
    %9 = vector.broadcast %cst_6 : f32 to vector<128x64xf32>
    %10 = arith.mulf %6, %9 : vector<128x64xf32>
    %11 = math.erf %10 : vector<128x64xf32>
    %cst_7 = arith.constant 1.000000e+00 : f32
    %12 = vector.broadcast %cst_7 : f32 to vector<128x64xf32>
    %13 = arith.addf %12, %11 : vector<128x64xf32>
    %14 = arith.mulf %8, %13 : vector<128x64xf32>
    %15 = arith.truncf %14 : vector<128x64xf32> to vector<128x64xbf16>
    %c0_8 = arith.constant 0 : index
    %c0_9 = arith.constant 0 : index
    %16 = vector.load %arg4[%c0_8, %c0_9] : memref<64x32xbf16, #tpu.memory_space<vmem>>, vector<64x32xbf16>
    %cst_10 = arith.constant dense<0.000000e+00> : vector<128x32xf32>
    %17 = tpu.matmul %15, %16, %cst_10 {dimension_numbers = #tpu.dot_dimension_numbers<[1], [0], [0], [1], [0, 0, 1, 1], [], []>} : vector<128x64xbf16>, vector<64x32xbf16>, vector<128x32xf32> -> vector<128x32xf32>
    %c0_11 = arith.constant 0 : index
    %c0_12 = arith.constant 0 : index
    %18 = vector.load %arg5[%c0_11, %c0_12] : memref<1x32xf32, #tpu.memory_space<vmem>>, vector<1x32xf32>
    %19 = vector.broadcast %18 : vector<1x32xf32> to vector<128x32xf32>
    %20 = arith.addf %17, %19 : vector<128x32xf32>
    %c0_13 = arith.constant 0 : index
    %c0_14 = arith.constant 0 : index
    %21 = vector.load %arg6[%c0_13, %c0_14] : memref<128x32xf32, #tpu.memory_space<vmem>>, vector<128x32xf32>
    tpu.vector_store %arg6[%c0_13, %c0_14], %20 {strides = array<i32>} : memref<128x32xf32, #tpu.memory_space<vmem>>, vector<128x32xf32>,
    return
  }
  func.func @transform_0(%arg0: i32) -> (i32, i32) {
    %c0_i32 = arith.constant 0 : i32
    %c0_i32_0 = arith.constant 0 : i32
    return %arg0, %c0_i32 : i32, i32
  }
  func.func @transform_1(%arg0: i32) -> (i32, i32) {
    %c0_i32 = arith.constant 0 : i32
    %c0_i32_0 = arith.constant 0 : i32
    %c0_i32_1 = arith.constant 0 : i32
    return %c0_i32, %c0_i32_0 : i32, i32
  }
  func.func @transform_2(%arg0: i32) -> (i32, i32) {
    %c0_i32 = arith.constant 0 : i32
    %c0_i32_0 = arith.constant 0 : i32
    %c0_i32_1 = arith.constant 0 : i32
    return %c0_i32, %c0_i32_0 : i32, i32
  }
  func.func @transform_3(%arg0: i32) -> (i32, i32) {
    %c0_i32 = arith.constant 0 : i32
    %c0_i32_0 = arith.constant 0 : i32
    %c0_i32_1 = arith.constant 0 : i32
    return %c0_i32, %c0_i32_0 : i32, i32
  }
  func.func @transform_4(%arg0: i32) -> (i32, i32) {
    %c0_i32 = arith.constant 0 : i32
    %c0_i32_0 = arith.constant 0 : i32
    %c0_i32_1 = arith.constant 0 : i32
    return %c0_i32, %c0_i32_0 : i32, i32
  }
  func.func @transform_5(%arg0: i32) -> (i32, i32) {
    %c0_i32 = arith.constant 0 : i32
    %c0_i32_0 = arith.constant 0 : i32
    return %arg0, %c0_i32 : i32, i32
  }
}

</mosaic_0001>

<bundles_post_ra>
// kernel: feedforward.1
= control target key start
LH: loop header
LB: loop body
LE: loop exit
PB: predicated region body
PF: predicated region fallthrough
CT: control target
= control target key end

     0   :  { %vm68_vm0 = vcmask 261120   ;;  %vm317_vm1 = vcmask 523264   ;;  %s799_s1 = inlined_call_operand.vmem [shape: bf16[32,64], index: 1, kind: input, shape index: {}]   ;;  %s800_s0 = inlined_call_operand.vmem [shape: f32[128,32], index: 0, kind: input, shape index: {}]   ;;  %s801_s3 = inlined_call_operand.vmem [shape: bf16[64,32], index: 3, kind: input, shape index: {}]   ;;  %s802_s2 = inlined_call_operand.vmem [shape: f32[1,64], index: 2, kind: input, shape index: {}]   ;;  %s803_s4 = inlined_call_operand.vmem [shape: f32[1,32], index: 4, kind: input, shape index: {}]   ;;  %s804_s5 = inlined_call_operand.vmem [shape: f32[128,32], index: 5, kind: output, shape index: {}]  }
   0x1   :  { %v549_v0 = vld [vmem:[%s799_s1] sm:$0xff]   ;;  %v550_v1 = vld [vmem:[%s799_s1 + $0x8] sm:$0xff]   ;;  %v23_v5 = vld [vmem:[%s800_s0 + $0x10] sm:$0xff] }
   0x2   :  { %505 = vmatprep.subr.bf16.mxu0 %v549_v0  ;;  %v21_v2 = vld [vmem:[%s800_s0] sm:$0xff]  ;;  %v22_v3 = vld [vmem:[%s800_s0 + $0x8] sm:$0xff]  ;;  %v24_v6 = vld [vmem:[%s800_s0 + $0x18] sm:$0xff] }
   0x3   :  { %506 = vmatpush3.bf16.msra.mxu0 %v549_v0  ;;  %v37_v4 = vpack.c.bf16 %v22_v3, %v21_v2  ;;  %v25_v7 = vld [vmem:[%s800_s0 + $0x20] sm:$0xff]  ;;  %v26_v8 = vld [vmem:[%s800_s0 + $0x28] sm:$0xff]  ;;  %v38_v9 = vpack.c.bf16 %v24_v6, %v23_v5  ;;  %v27_v11 = vld [vmem:[%s800_s0 + $0x30] sm:$0xff] }
   0x4   :  { %507 = vmatprep.subr.bf16.mxu0 %v550_v1  ;;  %v39_v10 = vpack.c.bf16 %v26_v8, %v25_v7  ;;  %v28_v12 = vld [vmem:[%s800_s0 + $0x38] sm:$0xff]  ;;  %v29_v13 = vld [vmem:[%s800_s0 + $0x40] sm:$0xff]  ;;  %v30_v14 = vld [vmem:[%s800_s0 + $0x48] sm:$0xff] }
   0x5   :  { %509 = vmatprep.mubr.msk.bf16.mxu0 %vm68_vm0, %v37_v4  ;;  %v40_v15 = vpack.c.bf16 %v28_v12, %v27_v11  ;;  %v41_v16 = vpack.c.bf16 %v30_v14, %v29_v13  ;;  %v31_v17 = vld [vmem:[%s800_s0 + $0x50] sm:$0xff]  ;;  %v32_v18 = vld [vmem:[%s800_s0 + $0x58] sm:$0xff]  ;;  %v33_v19 = vld [vmem:[%s800_s0 + $0x60] sm:$0xff] }
   0x6   :  { %v34_v20 = vld [vmem:[%s800_s0 + $0x68] sm:$0xff]  ;;  %v42_v21 = vpack.c.bf16 %v32_v18, %v31_v17  ;;  %v35_v23 = vld [vmem:[%s800_s0 + $0x70] sm:$0xff]  ;;  %v36_v24 = vld [vmem:[%s800_s0 + $0x78] sm:$0xff] }
   0x7   :  { %508 = vmatpush3.bf16.msra.mxu0 %v550_v1  ;;  %v43_v22 = vpack.c.bf16 %v34_v20, %v33_v19  ;;  %v44_v25 = vpack.c.bf16 %v36_v24, %v35_v23  ;;  %v551_v26 = vld [vmem:[%s801_s3] sm:$0xff]   ;;  %v552_v27 = vld [vmem:[%s801_s3 + $0x8] sm:$0xff]   ;;  %v553_v28 = vld [vmem:[%s801_s3 + $0x10] sm:$0xff]  }
   0x8   :  { %525 = vmatprep.subr.bf16.mxu1 %v551_v26  ;;  %v554_v29 = vld [vmem:[%s801_s3 + $0x18] sm:$0xff]   ;;  %v694_v30 = vld [vmem:[%s802_s2] ss:$0 sm:$0xff] }
   0x9   :  { %526 = vmatpush3.bf16.msra.mxu1 %v551_v26 }
   0xa   :  { %510 = vmatmul.mubr.msk.bf16.vlgmr.msra.gmra.mrb[0].mxu0 %vm68_vm0, %v38_v9  ;;  %527 = vmatprep.subr.bf16.mxu1 %v552_v27 }
   0xb   :  { %513 = vmatprep.mubr.msk.bf16.mxu0 %vm68_vm0, %v39_v10 }
   0xd   :  { %528 = vmatpush3.bf16.msra.mxu1 %v552_v27 }
   0xe   :  { %529 = vmatprep.subr.bf16.mxu1 %v553_v28 }
  0x11   :  { %530 = vmatpush3.bf16.msra.mxu1 %v553_v28 }
  0x12   :  { %514 = vmatmul.mubr.msk.bf16.gmra.mrb[4].mxu0 %vm68_vm0, %v40_v15  ;;  %531 = vmatprep.subr.bf16.mxu1 %v554_v29 }
  0x13   :  { %517 = vmatprep.mubr.msk.bf16.mxu0 %vm68_vm0, %v41_v16 }
  0x15   :  { %532 = vmatpush3.bf16.msra.mxu1 %v554_v29 }
  0x1a   :  { %518 = vmatmul.mubr.msk.bf16.gmra.mrb[8].mxu0 %vm68_vm0, %v42_v21 }
  0x1b   :  { %521 = vmatprep.mubr.msk.bf16.mxu0 %vm68_vm0, %v43_v22 }
  0x22   :  { %522 = vmatmul.mubr.msk.bf16.gmra.mrb[12].mxu0 %vm68_vm0, %v44_v25 }
  0xdd   :  { %v511_v31 = vpop.f32.mrb[0].mxu0 }
  0xde   :  { %v136_v32 = vadd.f32 %v511_v31, %v694_v30  ;;  %v127_v33 = vpop.f32.mrb[1].mxu0 }
  0xdf   :  { %v128_v34 = vadd.f32 %v694_v30, %v127_v33  ;;  %v512_v35 = vpop.f32.mrb[2].mxu0 }
  0xe0   :  { %v208_v36 = vmul.f32 0.70710677, %v136_v32  ;;  %v139_v37 = vadd.f32 %v512_v35, %v694_v30  ;;  %v130_v38 = vpop.f32.mrb[3].mxu0  ;;  %v192_v63 = vmul.f32 0.5, %v136_v32 }
  0xe1   :  { %v206_v39 = vmul.f32 0.70710677, %v128_v34  ;;  %v131_v40 = vadd.f32 %v694_v30, %v130_v38  ;;  %v190_v13 = vmul.f32 0.5, %v128_v34 }
  0xe2   :  { %555 = verf.f32 %v208_v36  ;;  %v209_v41 = vmul.f32 0.70710677, %v139_v37  ;;  %v193_v0 = vmul.f32 0.5, %v139_v37 }
  0xe3   :  { %557 = verf.f32 %v206_v39  ;;  %v207_v42 = vmul.f32 0.70710677, %v131_v40  ;;  %v191_v14 = vmul.f32 0.5, %v131_v40 }
  0xe4   :  { %559 = verf.f32 %v209_v41 }
  0xe5   :  { %561 = verf.f32 %v207_v42  ;;  %v515_v43 = vpop.f32.mrb[4].mxu0 }
  0xe6   :  { %v152_v44 = vadd.f32 %v515_v43, %v694_v30  ;;  %v143_v45 = vpop.f32.mrb[5].mxu0 }
  0xe7   :  { %v144_v46 = vadd.f32 %v694_v30, %v143_v45  ;;  %v516_v47 = vpop.f32.mrb[6].mxu0 }
  0xe8   :  { %v212_v48 = vmul.f32 0.70710677, %v152_v44  ;;  %v155_v49 = vadd.f32 %v516_v47, %v694_v30  ;;  %v146_v50 = vpop.f32.mrb[7].mxu0  ;;  %v196_v31 = vmul.f32 0.5, %v152_v44 }
  0xe9   :  { %v210_v51 = vmul.f32 0.70710677, %v144_v46  ;;  %v147_v52 = vadd.f32 %v694_v30, %v146_v50  ;;  %v194_v36 = vmul.f32 0.5, %v144_v46 }
  0xea   :  { %563 = verf.f32 %v212_v48  ;;  %v213_v53 = vmul.f32 0.70710677, %v155_v49  ;;  %v197_v32 = vmul.f32 0.5, %v155_v49 }
  0xeb   :  { %565 = verf.f32 %v210_v51  ;;  %v211_v54 = vmul.f32 0.70710677, %v147_v52  ;;  %v195_v37 = vmul.f32 0.5, %v147_v52 }
  0xec   :  { %v556_v55 = vpop.eup %555  ;;  %567 = verf.f32 %v213_v53 }
  0xed   :  { %v558_v56 = vpop.eup %557  ;;  %v240_v57 = vadd.f32 1.0, %v556_v55  ;;  %569 = verf.f32 %v211_v54  ;;  %v519_v58 = vpop.f32.mrb[8].mxu0 }
  0xee   :  { %v560_v59 = vpop.eup %559  ;;  %v705_v60 = vadd.f32 %v519_v58, %v694_v30  ;;  %v159_v61 = vpop.f32.mrb[9].mxu0  ;;  %v238_v7 = vadd.f32 1.0, %v558_v56 }
  0xef   :  { %v562_v62 = vpop.eup %561  ;;  %v241_v1 = vadd.f32 1.0, %v560_v59  ;;  %v708_v2 = vadd.f32 %v694_v30, %v159_v61  ;;  %v520_v3 = vpop.f32.mrb[10].mxu0  ;;  %v256_v9 = vmul.f32 %v240_v57, %v192_v63 }
  0xf0   :  { %v216_v4 = vmul.f32 0.70710677, %v705_v60  ;;  %v712_v5 = vadd.f32 %v520_v3, %v694_v30  ;;  %v162_v6 = vpop.f32.mrb[11].mxu0  ;;  %v239_v8 = vadd.f32 1.0, %v562_v62  ;;  %v254_v19 = vmul.f32 %v238_v7, %v190_v13 }
  0xf1   :  { %v257_v10 = vmul.f32 %v241_v1, %v193_v0  ;;  %v214_v11 = vmul.f32 0.70710677, %v708_v2  ;;  %v163_v12 = vadd.f32 %v694_v30, %v162_v6  ;;  %v200_v58 = vmul.f32 0.5, %v705_v60 }
  0xf2   :  { %571 = verf.f32 %v216_v4  ;;  %v217_v15 = vmul.f32 0.70710677, %v712_v5  ;;  %v255_v20 = vmul.f32 %v239_v8, %v191_v14  ;;  %v201_v59 = vmul.f32 0.5, %v712_v5 }
  0xf3   :  { %v271_v16 = vpack.c.bf16 %v257_v10, %v256_v9  ;;  %573 = verf.f32 %v214_v11  ;;  %v215_v17 = vmul.f32 0.70710677, %v163_v12  ;;  %v198_v61 = vmul.f32 0.5, %v708_v2 }
  0xf4   :  { %v564_v18 = vpop.eup %563  ;;  %575 = verf.f32 %v217_v15  ;;  %v270_v28 = vpack.c.bf16 %v255_v20, %v254_v19  ;;  %v199_v62 = vmul.f32 0.5, %v163_v12 }
  0xf5   :  { %v566_v21 = vpop.eup %565  ;;  %v244_v22 = vadd.f32 1.0, %v564_v18  ;;  %577 = verf.f32 %v215_v17  ;;  %v523_v23 = vpop.f32.mrb[12].mxu0 }
  0xf6   :  { %v568_v24 = vpop.eup %567  ;;  %v242_v25 = vadd.f32 1.0, %v566_v21  ;;  %v184_v26 = vadd.f32 %v523_v23, %v694_v30  ;;  %v175_v27 = vpop.f32.mrb[13].mxu0  ;;  %533 = vmatprep.mubr.msk.bf16.mxu1 %vm317_vm1, %v270_v28  ;;  %v470_v23 = vld [vmem:[%s803_s4] ss:$0 sm:$0xff] }
  0xf7   :  { %v570_v29 = vpop.eup %569  ;;  %v245_v33 = vadd.f32 1.0, %v568_v24  ;;  %v176_v34 = vadd.f32 %v694_v30, %v175_v27  ;;  %v524_v35 = vpop.f32.mrb[14].mxu0  ;;  %v260_v41 = vmul.f32 %v244_v22, %v196_v31  ;;  %534 = vmatmul.mubr.msk.bf16.vlgmr.msra.gmra.mrb[0].mxu1 %vm317_vm1, %v271_v16 }
  0xf8   :  { %v243_v38 = vadd.f32 1.0, %v570_v29  ;;  %v220_v39 = vmul.f32 0.70710677, %v184_v26  ;;  %v178_v40 = vpop.f32.mrb[15].mxu0  ;;  %v187_v45 = vadd.f32 %v524_v35, %v694_v30  ;;  %v258_v44 = vmul.f32 %v242_v25, %v194_v36 }
  0xf9   :  { %v261_v42 = vmul.f32 %v245_v33, %v197_v32  ;;  %v218_v43 = vmul.f32 0.70710677, %v176_v34  ;;  %v179_v48 = vadd.f32 %v694_v30, %v178_v40  ;;  %v204_v13 = vmul.f32 0.5, %v184_v26 }
  0xfa   :  { %v259_v47 = vmul.f32 %v243_v38, %v195_v37  ;;  %579 = verf.f32 %v220_v39  ;;  %v221_v46 = vmul.f32 0.70710677, %v187_v45  ;;  %v205_v2 = vmul.f32 0.5, %v187_v45 }
  0xfb   :  { %v273_v49 = vpack.c.bf16 %v261_v42, %v260_v41  ;;  %581 = verf.f32 %v218_v43  ;;  %v219_v52 = vmul.f32 0.70710677, %v179_v48  ;;  %v202_v14 = vmul.f32 0.5, %v176_v34 }
  0xfc   :  { %v572_v50 = vpop.eup %571  ;;  %v272_v51 = vpack.c.bf16 %v259_v47, %v258_v44  ;;  %583 = verf.f32 %v221_v46  ;;  %v203_v15 = vmul.f32 0.5, %v179_v48 }
  0xfd   :  { %v574_v53 = vpop.eup %573  ;;  %v248_v54 = vadd.f32 1.0, %v572_v50  ;;  %585 = verf.f32 %v219_v52 }
  0xfe   :  { %v576_v55 = vpop.eup %575  ;;  %v246_v56 = vadd.f32 1.0, %v574_v53  ;;  %537 = vmatprep.mubr.msk.bf16.mxu1 %vm317_vm1, %v272_v51 }
  0xff   :  { %v578_v57 = vpop.eup %577  ;;  %v249_v30 = vadd.f32 1.0, %v576_v55  ;;  %v264_v0 = vmul.f32 %v248_v54, %v200_v58  ;;  %538 = vmatmul.mubr.msk.bf16.gmra.mrb[4].mxu1 %vm317_vm1, %v273_v49 }
 0x100   :  { %v247_v63 = vadd.f32 1.0, %v578_v57  ;;  %v262_v3 = vmul.f32 %v246_v56, %v198_v61 }
 0x101   :  { %v265_v1 = vmul.f32 %v249_v30, %v201_v59 }
 0x102   :  { %v263_v4 = vmul.f32 %v247_v63, %v199_v62 }
 0x103   :  { %v275_v6 = vpack.c.bf16 %v265_v1, %v264_v0 }
 0x104   :  { %v580_v7 = vpop.eup %579  ;;  %v274_v8 = vpack.c.bf16 %v263_v4, %v262_v3 }
 0x105   :  { %v582_v9 = vpop.eup %581  ;;  %v252_v10 = vadd.f32 1.0, %v580_v7 }
 0x106   :  { %541 = vmatprep.mubr.msk.bf16.mxu1 %vm317_vm1, %v274_v8  ;;  %v584_v60 = vpop.eup %583  ;;  %v250_v5 = vadd.f32 1.0, %v582_v9 }
 0x107   :  { %v586_v11 = vpop.eup %585  ;;  %v253_v12 = vadd.f32 1.0, %v584_v60  ;;  %542 = vmatmul.mubr.msk.bf16.gmra.mrb[8].mxu1 %vm317_vm1, %v275_v6  ;;  %v268_v17 = vmul.f32 %v252_v10, %v204_v13 }
 0x108   :  { %v251_v16 = vadd.f32 1.0, %v586_v11  ;;  %v266_v19 = vmul.f32 %v250_v5, %v202_v14 }
 0x109   :  { %v269_v18 = vmul.f32 %v253_v12, %v205_v2 }
 0x10a   :  { %v267_v20 = vmul.f32 %v251_v16, %v203_v15 }
 0x10b   :  { %v277_v21 = vpack.c.bf16 %v269_v18, %v268_v17 }
 0x10c   :  { %v276_v22 = vpack.c.bf16 %v267_v20, %v266_v19 }
 0x10e   :  { %545 = vmatprep.mubr.msk.bf16.mxu1 %vm317_vm1, %v276_v22 }
 0x10f   :  { %546 = vmatmul.mubr.msk.bf16.gmra.mrb[12].mxu1 %vm317_vm1, %v277_v21 }
 0x1ca   :  { %v535_v24 = vpop.f32.mrb[0].mxu1 }
 0x1cb   :  { %v385_v25 = vadd.f32 %v535_v24, %v470_v23  ;;  %v376_v26 = vpop.f32.mrb[1].mxu1 }
 0x1cc   :  { %v377_v27 = vadd.f32 %v470_v23, %v376_v26  ;;  %v536_v28 = vpop.f32.mrb[2].mxu1 }
 0x1cd   :  { %441 = vst.msk [vmem:[%s804_s5 + $0x10] sm:$0xff] %vm68_vm0, %v385_v25  ;;  %v388_v29 = vadd.f32 %v536_v28, %v470_v23  ;;  %v379_v31 = vpop.f32.mrb[3].mxu1 }
 0x1ce   :  { %439 = vst.msk [vmem:[%s804_s5] sm:$0xff] %vm68_vm0, %v377_v27  ;;  %v380_v32 = vadd.f32 %v470_v23, %v379_v31 }
 0x1cf   :  { %442 = vst.msk [vmem:[%s804_s5 + $0x18] sm:$0xff] %vm68_vm0, %v388_v29 }
 0x1d0   :  { %440 = vst.msk [vmem:[%s804_s5 + $0x8] sm:$0xff] %vm68_vm0, %v380_v32 }
 0x1d2   :  { %v539_v33 = vpop.f32.mrb[4].mxu1 }
 0x1d3   :  { %v401_v34 = vadd.f32 %v539_v33, %v470_v23  ;;  %v392_v35 = vpop.f32.mrb[5].mxu1 }
 0x1d4   :  { %v393_v36 = vadd.f32 %v470_v23, %v392_v35  ;;  %v540_v37 = vpop.f32.mrb[6].mxu1 }
 0x1d5   :  { %445 = vst.msk [vmem:[%s804_s5 + $0x30] sm:$0xff] %vm68_vm0, %v401_v34  ;;  %v404_v38 = vadd.f32 %v540_v37, %v470_v23  ;;  %v395_v39 = vpop.f32.mrb[7].mxu1 }
 0x1d6   :  { %443 = vst.msk [vmem:[%s804_s5 + $0x20] sm:$0xff] %vm68_vm0, %v393_v36  ;;  %v396_v40 = vadd.f32 %v470_v23, %v395_v39 }
 0x1d7   :  { %446 = vst.msk [vmem:[%s804_s5 + $0x38] sm:$0xff] %vm68_vm0, %v404_v38 }
 0x1d8   :  { %444 = vst.msk [vmem:[%s804_s5 + $0x28] sm:$0xff] %vm68_vm0, %v396_v40 }
 0x1da   :  { %v543_v41 = vpop.f32.mrb[8].mxu1 }
 0x1db   :  { %v417_v42 = vadd.f32 %v543_v41, %v470_v23  ;;  %v408_v43 = vpop.f32.mrb[9].mxu1 }
 0x1dc   :  { %v409_v45 = vadd.f32 %v470_v23, %v408_v43  ;;  %v544_v44 = vpop.f32.mrb[10].mxu1 }
 0x1dd   :  { %449 = vst.msk [vmem:[%s804_s5 + $0x50] sm:$0xff] %vm68_vm0, %v417_v42  ;;  %v420_v47 = vadd.f32 %v544_v44, %v470_v23  ;;  %v411_v48 = vpop.f32.mrb[11].mxu1 }
 0x1de   :  { %447 = vst.msk [vmem:[%s804_s5 + $0x40] sm:$0xff] %vm68_vm0, %v409_v45  ;;  %v412_v49 = vadd.f32 %v470_v23, %v411_v48 }
 0x1df   :  { %450 = vst.msk [vmem:[%s804_s5 + $0x58] sm:$0xff] %vm68_vm0, %v420_v47 }
 0x1e0   :  { %448 = vst.msk [vmem:[%s804_s5 + $0x48] sm:$0xff] %vm68_vm0, %v412_v49 }
 0x1e2   :  { %v547_v46 = vpop.f32.mrb[12].mxu1 }
 0x1e3   :  { %v433_v50 = vadd.f32 %v547_v46, %v470_v23  ;;  %v424_v51 = vpop.f32.mrb[13].mxu1 }
 0x1e4   :  { %v425_v52 = vadd.f32 %v470_v23, %v424_v51  ;;  %v548_v53 = vpop.f32.mrb[14].mxu1 }
 0x1e5   :  { %453 = vst.msk [vmem:[%s804_s5 + $0x70] sm:$0xff] %vm68_vm0, %v433_v50  ;;  %v436_v54 = vadd.f32 %v548_v53, %v470_v23  ;;  %v427_v55 = vpop.f32.mrb[15].mxu1 }
 0x1e6   :  { %451 = vst.msk [vmem:[%s804_s5 + $0x60] sm:$0xff] %vm68_vm0, %v425_v52  ;;  %v428_v56 = vadd.f32 %v470_v23, %v427_v55 }
 0x1e7   :  { %454 = vst.msk [vmem:[%s804_s5 + $0x78] sm:$0xff] %vm68_vm0, %v436_v54 }
 0x1e8   :  { %452 = vst.msk [vmem:[%s804_s5 + $0x68] sm:$0xff] %vm68_vm0, %v428_v56 }

</bundles_post_ra>
